<compile_context>
chip_gen: v6e
topology: v6e:2x2x1
jax: 0.10.0
libtpu: 0.0.40
codegen_flags: <defaults>
</compile_context>

<pallas_src>
import functools

import jax
import jax.numpy as jnp
from jax import lax
from jax.experimental import pallas as pl
from jax.experimental.pallas import tpu as pltpu

_LANE = 128
_SUBLANE = 8
_VMEM_LIMIT = 32 * 1024 * 1024


def _round_up(x, m):
    return (x + m - 1) // m * m


def _pick_batch_tile(Bp, block_b):
    """Largest multiple of 8 <= block_b that divides Bp (Bp is a multiple of 8)."""
    cap = min(block_b, Bp)
    cap -= cap % _SUBLANE
    for t in range(cap, 0, -_SUBLANE):
        if Bp % t == 0:
            return t
    return Bp


# ---------------------------------------------------------------------------
# One-time parameter padding (done OUTSIDE the per-call wrappers).
# Feature dims are zero-padded to the 128-lane axis; padded rows/cols are inert.
# ---------------------------------------------------------------------------
def pad_params(w1, b1, w2, b2):
    D, H = w1.shape
    Dp, Hp = _round_up(D, _LANE), _round_up(H, _LANE)
    w1p = jnp.zeros((Dp, Hp), w1.dtype).at[:D, :H].set(w1)
    b1p = jnp.zeros((1, Hp), b1.dtype).at[:, :H].set(jnp.reshape(b1, (1, H)))
    w2p = jnp.zeros((Hp, Dp), w2.dtype).at[:H, :D].set(w2)
    b2p = jnp.zeros((1, Dp), b2.dtype).at[:, :D].set(jnp.reshape(b2, (1, D)))
    return w1p, b1p, w2p, b2p


def _pad_z(z, block_b):
    B, D = z.shape
    Dp = _round_up(D, _LANE)
    Bp = _round_up(B, _SUBLANE)
    TB = _pick_batch_tile(Bp, block_b)
    zp = jnp.zeros((Bp, Dp), z.dtype).at[:B, :D].set(z)
    return zp, (B, D, Bp, Dp, TB)


# ---------------------------------------------------------------------------
# Single evaluation: f(t, z) = tanh(z @ W1 + b1) @ W2 + b2
# ---------------------------------------------------------------------------
def _odefunc_kernel(z_ref, w1_ref, b1_ref, w2_ref, b2_ref, o_ref):
    h = jnp.dot(z_ref[...], w1_ref[...], preferred_element_type=jnp.float32)
    h = jnp.tanh(h + b1_ref[...])                      # bias add + tanh in f32 (VPU/EUP)
    out = jnp.dot(h, w2_ref[...], preferred_element_type=jnp.float32)
    o_ref[...] = (out + b2_ref[...]).astype(o_ref.dtype)


@functools.partial(jax.jit, static_argnames=("block_b",))
def odefunc_forward(t, z, w1p, b1p, w2p, b2p, *, block_b=1024):
    """Pallas equivalent of ODEFunc.forward(t, z) = net(z). `t` is unused."""
    del t  # unused, matches PyTorch semantics
    zp, (B, D, Bp, Dp, TB) = _pad_z(z, block_b)
    Hp = w1p.shape[1]
    n_tiles = Bp // TB

    cost = pl.CostEstimate(
        flops=4 * Bp * Dp * Hp,
        transcendentals=Bp * Hp,
        bytes_accessed=4 * (2 * Bp * Dp + 2 * Dp * Hp + Hp + Dp),
    )

    out = pl.pallas_call(
        _odefunc_kernel,
        out_shape=jax.ShapeDtypeStruct((Bp, Dp), z.dtype),
        grid_spec=pltpu.PrefetchScalarGridSpec(
            num_scalar_prefetch=0,
            grid=(n_tiles,),
            in_specs=[
                pl.BlockSpec((TB, Dp), lambda i: (i, 0)),   # z tile
                pl.BlockSpec((Dp, Hp), lambda i: (0, 0)),   # W1 (VMEM-resident)
                pl.BlockSpec((1, Hp), lambda i: (0, 0)),    # b1
                pl.BlockSpec((Hp, Dp), lambda i: (0, 0)),   # W2
                pl.BlockSpec((1, Dp), lambda i: (0, 0)),    # b2
            ],
            out_specs=pl.BlockSpec((TB, Dp), lambda i: (i, 0)),
        ),
        compiler_params=pltpu.CompilerParams(
            dimension_semantics=("parallel",),
            vmem_limit_bytes=_VMEM_LIMIT),
        cost_estimate=cost,
    )(zp, w1p, b1p, w2p, b2p)
    return out[:B, :D]


# ---------------------------------------------------------------------------
# Fused fixed-step Euler integration of dz/dt = f(t, z).
# The full step loop runs INSIDE the kernel (lax.fori_loop, unrolled); the grid
# only tiles the batch ("parallel" -> both v7x TensorCores, bounded VMEM).
# Weights are DMA'd once per tile; biases are broadcast once before the loop.
# ---------------------------------------------------------------------------
def _make_euler_kernel(dt, n_steps):
    def kernel(z_ref, w1_ref, b1_ref, w2_ref, b2_ref, o_ref):
        tb, dp = z_ref.shape
        hp = w1_ref.shape[1]
        w1 = w1_ref[...]
        w2 = w2_ref[...]
        b1 = jnp.broadcast_to(b1_ref[...], (tb, hp))   # hoisted out of the step loop
        b2 = jnp.broadcast_to(b2_ref[...], (tb, dp))   # (JAX does not CSE broadcasts)
        z0 = z_ref[...].astype(jnp.float32)

        def body(_, z):
            h = jnp.tanh(jnp.dot(z, w1, preferred_element_type=jnp.float32) + b1)
            dz = jnp.dot(h, w2, preferred_element_type=jnp.float32) + b2
            return z + dt * dz

        z_final = lax.fori_loop(0, n_steps, body, z0, unroll=True)
        o_ref[...] = z_final.astype(o_ref.dtype)

    return kernel


@functools.partial(jax.jit, static_argnames=("dt", "n_steps", "block_b"))
def odefunc_integrate(z0, w1p, b1p, w2p, b2p, *, dt, n_steps, block_b=1024):
    """z_{k+1} = z_k + dt * f(t_k, z_k), n_steps times, fused into one kernel."""
    # TODO(synk): higher-order solvers (RK4/adaptive) would follow the same pattern.
    zp, (B, D, Bp, Dp, TB) = _pad_z(z0, block_b)
    Hp = w1p.shape[1]
    n_tiles = Bp // TB

    cost = pl.CostEstimate(
        flops=n_steps * 4 * Bp * Dp * Hp,
        transcendentals=n_steps * Bp * Hp,
        bytes_accessed=4 * (2 * Bp * Dp + 2 * Dp * Hp + Hp + Dp),
    )

    out = pl.pallas_call(
        _make_euler_kernel(float(dt), int(n_steps)),
        out_shape=jax.ShapeDtypeStruct((Bp, Dp), z0.dtype),
        grid_spec=pltpu.PrefetchScalarGridSpec(
            num_scalar_prefetch=0,
            grid=(n_tiles,),
            in_specs=[
                pl.BlockSpec((TB, Dp), lambda i: (i, 0)),   # z0 tile
                pl.BlockSpec((Dp, Hp), lambda i: (0, 0)),   # W1 resident
                pl.BlockSpec((1, Hp), lambda i: (0, 0)),    # b1
                pl.BlockSpec((Hp, Dp), lambda i: (0, 0)),   # W2
                pl.BlockSpec((1, Dp), lambda i: (0, 0)),    # b2
            ],
            out_specs=pl.BlockSpec((TB, Dp), lambda i: (i, 0)),
        ),
        compiler_params=pltpu.CompilerParams(
            dimension_semantics=("parallel",),
            vmem_limit_bytes=_VMEM_LIMIT),
        cost_estimate=cost,
        input_output_aliases={0: 0},   # reuse padded z0 buffer for the output
    )(zp, w1p, b1p, w2p, b2p)
    return out[:B, :D]


def init_params(key, latent_dim, hidden=32, dtype=jnp.float32):
    """Deterministic PyTorch-style (uniform fan_in) init for the two Linear layers."""
    k1, k2, k3, k4 = jax.random.split(key, 4)
    bound1 = 1.0 / jnp.sqrt(latent_dim)
    bound2 = 1.0 / jnp.sqrt(hidden)
    # Stored pre-transposed as (in, out) for the kernel.
    w1 = jax.random.uniform(k1, (latent_dim, hidden), dtype, -bound1, bound1)
    b1 = jax.random.uniform(k2, (1, hidden), dtype, -bound1, bound1)
    w2 = jax.random.uniform(k3, (hidden, latent_dim), dtype, -bound2, bound2)
    b2 = jax.random.uniform(k4, (1, latent_dim), dtype, -bound2, bound2)
    return w1, b1, w2, b2


if __name__ == "__main__":
    latent_dim, hidden, batch = 16, 32, 8

    key = jax.random.PRNGKey(0)
    kp, kz = jax.random.split(key)
    w1, b1, w2, b2 = init_params(kp, latent_dim, hidden)
    z = jax.random.normal(kz, (batch, latent_dim), jnp.float32)
    t = jnp.float32(0.0)  # unused; mirrors the PyTorch signature

    # Pad the parameters ONCE (cached preprocessing; not part of the hot path).
    w1p, b1p, w2p, b2p = pad_params(w1, b1, w2, b2)

    # --- single evaluation: matches ODEFunc.forward(t, z) ---
    out = odefunc_forward(t, z, w1p, b1p, w2p, b2p)
    jax.block_until_ready(out)
    ref = jnp.tanh(z @ w1 + b1) @ w2 + b2
    assert out.shape == (batch, latent_dim)
    assert jnp.allclose(out, ref, atol=1e-5, rtol=1e-5)

    # --- fused solver loop: n_steps Euler evaluations inside one pallas_call ---
    dt, n_steps = 0.05, 16
    z_T = odefunc_integrate(z, w1p, b1p, w2p, b2p, dt=dt, n_steps=n_steps)
    jax.block_until_ready(z_T)

    def euler_ref(zz):
        def body(_, acc):
            return acc + dt * (jnp.tanh(acc @ w1 + b1) @ w2 + b2)
        return lax.fori_loop(0, n_steps, body, zz)

    ref_T = euler_ref(z)
    assert z_T.shape == (batch, latent_dim)
    assert jnp.allclose(z_T, ref_T, atol=1e-3, rtol=1e-3)

    print("KERNEL_OK")
</pallas_src>

<mosaic_0001>
module attributes {stable_mosaic.version = 11 : i64} {
  func.func @_odefunc_kernel(%arg0: i32, %arg1: memref<8x128xf32, #tpu.memory_space<vmem>>, %arg2: memref<128x128xf32, #tpu.memory_space<vmem>>, %arg3: memref<1x128xf32, #tpu.memory_space<vmem>>, %arg4: memref<128x128xf32, #tpu.memory_space<vmem>>, %arg5: memref<1x128xf32, #tpu.memory_space<vmem>>, %arg6: memref<8x128xf32, #tpu.memory_space<vmem>>) attributes {dimension_semantics = [#tpu.dimension_semantics<parallel>], iteration_bounds = array<i64: 1>, scalar_prefetch = 0 : i64, scratch_operands = 0 : i64, tpu.core_type = #tpu.core_type<tc>, window_params = [{transform_indices = @transform_0, window_bounds = array<i64: 8, 128>}, {pipeline_mode = #tpu.pipeline_mode<synchronous>, transform_indices = @transform_1, window_bounds = array<i64: 128, 128>}, {pipeline_mode = #tpu.pipeline_mode<synchronous>, transform_indices = @transform_2, window_bounds = array<i64: 1, 128>}, {pipeline_mode = #tpu.pipeline_mode<synchronous>, transform_indices = @transform_3, window_bounds = array<i64: 128, 128>}, {pipeline_mode = #tpu.pipeline_mode<synchronous>, transform_indices = @transform_4, window_bounds = array<i64: 1, 128>}, {transform_indices = @transform_5, window_bounds = array<i64: 8, 128>}]} {
    %c0 = arith.constant 0 : index
    %c0_0 = arith.constant 0 : index
    %0 = vector.load %arg1[%c0, %c0_0] : memref<8x128xf32, #tpu.memory_space<vmem>>, vector<8x128xf32>
    %c0_1 = arith.constant 0 : index
    %c0_2 = arith.constant 0 : index
    %1 = vector.load %arg2[%c0_1, %c0_2] : memref<128x128xf32, #tpu.memory_space<vmem>>, vector<128x128xf32>
    %cst = arith.constant dense<0.000000e+00> : vector<8x128xf32>
    %2 = tpu.matmul %0, %1, %cst {dimension_numbers = #tpu.dot_dimension_numbers<[1], [0], [0], [1], [0, 0, 1, 1], [], []>} : vector<8x128xf32>, vector<128x128xf32>, vector<8x128xf32> -> vector<8x128xf32>
    %c0_3 = arith.constant 0 : index
    %c0_4 = arith.constant 0 : index
    %3 = vector.load %arg3[%c0_3, %c0_4] : memref<1x128xf32, #tpu.memory_space<vmem>>, vector<1x128xf32>
    %4 = vector.broadcast %3 : vector<1x128xf32> to vector<8x128xf32>
    %5 = arith.addf %2, %4 : vector<8x128xf32>
    %6 = math.tanh %5 : vector<8x128xf32>
    %c0_5 = arith.constant 0 : index
    %c0_6 = arith.constant 0 : index
    %7 = vector.load %arg4[%c0_5, %c0_6] : memref<128x128xf32, #tpu.memory_space<vmem>>, vector<128x128xf32>
    %cst_7 = arith.constant dense<0.000000e+00> : vector<8x128xf32>
    %8 = tpu.matmul %6, %7, %cst_7 {dimension_numbers = #tpu.dot_dimension_numbers<[1], [0], [0], [1], [0, 0, 1, 1], [], []>} : vector<8x128xf32>, vector<128x128xf32>, vector<8x128xf32> -> vector<8x128xf32>
    %c0_8 = arith.constant 0 : index
    %c0_9 = arith.constant 0 : index
    %9 = vector.load %arg5[%c0_8, %c0_9] : memref<1x128xf32, #tpu.memory_space<vmem>>, vector<1x128xf32>
    %10 = vector.broadcast %9 : vector<1x128xf32> to vector<8x128xf32>
    %11 = arith.addf %8, %10 : vector<8x128xf32>
    %c0_10 = arith.constant 0 : index
    %c0_11 = arith.constant 0 : index
    %12 = vector.load %arg6[%c0_10, %c0_11] : memref<8x128xf32, #tpu.memory_space<vmem>>, vector<8x128xf32>
    tpu.vector_store %arg6[%c0_10, %c0_11], %11 {strides = array<i32>} : memref<8x128xf32, #tpu.memory_space<vmem>>, vector<8x128xf32>,
    return
  }
  func.func @transform_0(%arg0: i32) -> (i32, i32) {
    %c0_i32 = arith.constant 0 : i32
    %c0_i32_0 = arith.constant 0 : i32
    return %arg0, %c0_i32 : i32, i32
  }
  func.func @transform_1(%arg0: i32) -> (i32, i32) {
    %c0_i32 = arith.constant 0 : i32
    %c0_i32_0 = arith.constant 0 : i32
    %c0_i32_1 = arith.constant 0 : i32
    return %c0_i32, %c0_i32_0 : i32, i32
  }
  func.func @transform_2(%arg0: i32) -> (i32, i32) {
    %c0_i32 = arith.constant 0 : i32
    %c0_i32_0 = arith.constant 0 : i32
    %c0_i32_1 = arith.constant 0 : i32
    return %c0_i32, %c0_i32_0 : i32, i32
  }
  func.func @transform_3(%arg0: i32) -> (i32, i32) {
    %c0_i32 = arith.constant 0 : i32
    %c0_i32_0 = arith.constant 0 : i32
    %c0_i32_1 = arith.constant 0 : i32
    return %c0_i32, %c0_i32_0 : i32, i32
  }
  func.func @transform_4(%arg0: i32) -> (i32, i32) {
    %c0_i32 = arith.constant 0 : i32
    %c0_i32_0 = arith.constant 0 : i32
    %c0_i32_1 = arith.constant 0 : i32
    return %c0_i32, %c0_i32_0 : i32, i32
  }
  func.func @transform_5(%arg0: i32) -> (i32, i32) {
    %c0_i32 = arith.constant 0 : i32
    %c0_i32_0 = arith.constant 0 : i32
    return %arg0, %c0_i32 : i32, i32
  }
}

</mosaic_0001>

<bundles_post_ra>
// kernel: odefunc_forward.1
= control target key start
LH: loop header
LB: loop body
LE: loop exit
PB: predicated region body
PF: predicated region fallthrough
CT: control target
= control target key end

     0   :  { %10 = vsyncpa [#allocation3], 0  ;;  %s524_s0 = inlined_call_operand.vmem [shape: f32[8,128], index: 0, kind: input, shape index: {}]   ;;  %s525_s1 = inlined_call_operand.hbm [shape: f32[128,128], index: 1, kind: input, shape index: {}]   ;;  %s526_s2 = inlined_call_operand.vmem [shape: f32[1,128], index: 2, kind: input, shape index: {}]   ;;  %s527_s3 = inlined_call_operand.hbm [shape: f32[128,128], index: 3, kind: input, shape index: {}]   ;;  %s528_s4 = inlined_call_operand.vmem [shape: f32[1,128], index: 4, kind: input, shape index: {}]   ;;  %s529_s5 = inlined_call_operand.hbm [shape: f32[8,128], index: 5, kind: output, shape index: {}]  }
   0x1   :  { %11 = vsyncpa [#allocation6], 0 }
   0x2   :  { %12 = vsyncpa [#allocation4], 0  ;;  %s435_s18 = smov [#allocation2]  }
   0x3   :  { %s20_s19 = sshll.u32 %s435_s18, 4  ;;  %s21_s19 = int_to_ptr.vmem [resolvable:$true] %s20_s19 }
   0x4   :  { %s377_s20 = scalar_lea.vmem %s21_s19, 2048  ;;  %p382_p1 = scmp.lt.s32.totalorder %s21_s19, %s21_s19 }
   0x5   :  { %p378_p0 = scmp.ne.s32.totalorder %s21_s19, %s377_s20  ;;  %p383_p2 = scmp.lt.s32.totalorder %s377_s20, %s377_s20 }
   0x7   :  { %p384_p3 = por %p383_p2, %p382_p1 }
   0x9   :  { %p385_p4 = pnand %p384_p3, %p378_p0 }
   0xb   :  { %388 = shalt.err (!%p385_p4)
}
   0xc   :  { %s436_s21 = smov 128   ;;  %s437_s22 = smov 8  }
   0xd   :  { %26 = dma.hbm_to_vmem [thread:$0]  %s525_s1, 2048, %s21_s19, [#allocation3], %s436_s21, %s436_s21, %s437_s22  }
   0xe   :  { %s438_s25 = smov [#allocation5]  }
   0xf   :  { %s34_s26 = sshll.u32 %s438_s25, 4  ;;  %s35_s26 = int_to_ptr.vmem [resolvable:$true] %s34_s26 }
  0x10   :  { %s397_s27 = scalar_lea.vmem %s35_s26, 2048  ;;  %p402_p6 = scmp.lt.s32.totalorder %s35_s26, %s35_s26 }
  0x11   :  { %p398_p5 = scmp.ne.s32.totalorder %s35_s26, %s397_s27  ;;  %p403_p7 = scmp.lt.s32.totalorder %s397_s27, %s397_s27 }
  0x13   :  { %p404_p8 = por %p403_p7, %p402_p6 }
  0x15   :  { %p405_p9 = pnand %p404_p8, %p398_p5 }
  0x17   :  { %408 = shalt.err (!%p405_p9)
}
  0x18   :  { %40 = dma.hbm_to_vmem [thread:$0]  %s527_s3, 2048, %s35_s26, [#allocation6], %s436_s21, %s436_s21, %s437_s22  }
  0x19   :  { %429 = dma.done.wait [#allocation3], 2048  }
  0x1a   :  { %430 = vsyncadd [#allocation3], 4294965248 }
  0x1b   :  { %431 = dma.done.wait [#allocation6], 2048  }
  0x1c   :  { %432 = vsyncadd [#allocation6], 4294965248  ;;  %v439_v0 = vmov 0.0   ;;  %vm440_vm0 = vmmov 0   ;;  %v65_v1 = vld [vmem:[#allocation2 + $0x78] sm:$0xff]  ;;  %v64_v2 = vld [vmem:[#allocation2 + $0x70] sm:$0xff] }
  0x1d   :  { %290 = vmatprep.subr.mxu0 %v439_v0  ;;  %322 = vmatprep.mubr.msk.f32.mxu0 %vm440_vm0, %v439_v0  ;;  %v63_v3 = vld [vmem:[#allocation2 + $0x68] sm:$0xff]  ;;  %v62_v4 = vld [vmem:[#allocation2 + $0x60] sm:$0xff]  ;;  %v159_v5 = vld [vmem:[#allocation5 + $0x78] sm:$0xff]  ;;  %s441_s8 = smov [#allocation7]  }
  0x1e   :  { %325 = vmatprep.subr.mxu1 %v439_v0  ;;  %357 = vmatprep.mubr.msk.f32.mxu1 %vm440_vm0, %v439_v0  ;;  %v61_v6 = vld [vmem:[#allocation2 + $0x58] sm:$0xff]  ;;  %v158_v7 = vld [vmem:[#allocation5 + $0x70] sm:$0xff]  ;;  %v157_v8 = vld [vmem:[#allocation5 + $0x68] sm:$0xff]  ;;  %s244_s9 = sshll.u32 %s441_s8, 4  ;;  %s245_s9 = int_to_ptr.vmem [resolvable:$true] %s244_s9 }
  0x1f   :  { %291 = vmatpush3.msra.mxu0 %v65_v1  ;;  %326 = vmatpush3.msra.mxu1 %v159_v5  ;;  %v60_v9 = vld [vmem:[#allocation2 + $0x50] sm:$0xff]  ;;  %v156_v10 = vld [vmem:[#allocation5 + $0x60] sm:$0xff]  ;;  %v59_v11 = vld [vmem:[#allocation2 + $0x48] sm:$0xff]  ;;  %s409_s10 = scalar_lea.vmem %s245_s9, 128  ;;  %p414_p11 = scmp.lt.s32.totalorder %s245_s9, %s245_s9 }
  0x20   :  { %292 = vmatprep.subr.mxu0 %v439_v0  ;;  %327 = vmatprep.subr.mxu1 %v439_v0  ;;  %v155_v12 = vld [vmem:[#allocation5 + $0x58] sm:$0xff]  ;;  %v58_v13 = vld [vmem:[#allocation2 + $0x40] sm:$0xff]  ;;  %v154_v14 = vld [vmem:[#allocation5 + $0x50] sm:$0xff]  ;;  %p410_p10 = scmp.ne.s32.totalorder %s245_s9, %s409_s10  ;;  %p415_p12 = scmp.lt.s32.totalorder %s409_s10, %s409_s10 }
  0x21   :  { %293 = vmatpush3.msra.mxu0 %v64_v2  ;;  %328 = vmatpush3.msra.mxu1 %v158_v7  ;;  %v57_v15 = vld [vmem:[#allocation2 + $0x38] sm:$0xff]  ;;  %v153_v16 = vld [vmem:[#allocation5 + $0x48] sm:$0xff]  ;;  %v56_v17 = vld [vmem:[#allocation2 + $0x30] sm:$0xff] }
  0x22   :  { %294 = vmatprep.subr.mxu0 %v439_v0  ;;  %329 = vmatprep.subr.mxu1 %v439_v0  ;;  %v55_v18 = vld [vmem:[#allocation2 + $0x28] sm:$0xff]  ;;  %v54_v19 = vld [vmem:[#allocation2 + $0x20] sm:$0xff]  ;;  %v53_v20 = vld [vmem:[#allocation2 + $0x18] sm:$0xff]  ;;  %p416_p13 = por %p415_p12, %p414_p11 }
  0x23   :  { %295 = vmatpush3.msra.mxu0 %v63_v3  ;;  %330 = vmatpush3.msra.mxu1 %v157_v8  ;;  %v52_v21 = vld [vmem:[#allocation2 + $0x10] sm:$0xff]  ;;  %v51_v22 = vld [vmem:[#allocation2 + $0x8] sm:$0xff]  ;;  %v50_v23 = vld [vmem:[#allocation2] sm:$0xff] }
  0x24   :  { %296 = vmatprep.subr.mxu0 %v439_v0  ;;  %331 = vmatprep.subr.mxu1 %v439_v0  ;;  %v49_v24 = vld [vmem:[%s524_s0] sm:$0xff]  ;;  %v151_v26 = vld [vmem:[#allocation5 + $0x38] sm:$0xff]  ;;  %v150_v27 = vld [vmem:[#allocation5 + $0x30] sm:$0xff]  ;;  %p417_p0 = pnand %p416_p13, %p410_p10 }
  0x25   :  { %297 = vmatpush3.msra.mxu0 %v62_v4  ;;  %332 = vmatpush3.msra.mxu1 %v156_v10  ;;  %v152_v25 = vld [vmem:[#allocation5 + $0x40] sm:$0xff]  ;;  %v149_v28 = vld [vmem:[#allocation5 + $0x28] sm:$0xff]  ;;  %v147_v30 = vld [vmem:[#allocation5 + $0x18] sm:$0xff] }
  0x26   :  { %298 = vmatprep.subr.mxu0 %v439_v0  ;;  %333 = vmatprep.subr.mxu1 %v439_v0  ;;  %v148_v29 = vld [vmem:[#allocation5 + $0x20] sm:$0xff]  ;;  %v146_v31 = vld [vmem:[#allocation5 + $0x10] sm:$0xff]  ;;  %v145_v32 = vld [vmem:[#allocation5 + $0x8] sm:$0xff] }
  0x27   :  { %299 = vmatpush3.msra.mxu0 %v61_v6  ;;  %334 = vmatpush3.msra.mxu1 %v155_v12  ;;  %v144_v33 = vld [vmem:[#allocation5] sm:$0xff] }
  0x28   :  { %300 = vmatprep.subr.mxu0 %v439_v0  ;;  %335 = vmatprep.subr.mxu1 %v439_v0  ;;  %v254_v34 = vld [vmem:[%s526_s2] ss:$0 sm:$0xff] }
  0x29   :  { %301 = vmatpush3.msra.mxu0 %v60_v9  ;;  %336 = vmatpush3.msra.mxu1 %v154_v14  ;;  %v255_v39 = vld [vmem:[%s528_s4] ss:$0 sm:$0xff] }
  0x2a   :  { %302 = vmatprep.subr.mxu0 %v439_v0  ;;  %337 = vmatprep.subr.mxu1 %v439_v0 }
  0x2b   :  { %303 = vmatpush3.msra.mxu0 %v59_v11  ;;  %338 = vmatpush3.msra.mxu1 %v153_v16 }
  0x2c   :  { %304 = vmatprep.subr.mxu0 %v439_v0  ;;  %339 = vmatprep.subr.mxu1 %v439_v0 }
  0x2d   :  { %305 = vmatpush3.msra.mxu0 %v58_v13  ;;  %340 = vmatpush3.msra.mxu1 %v152_v25 }
  0x2e   :  { %306 = vmatprep.subr.mxu0 %v439_v0  ;;  %341 = vmatprep.subr.mxu1 %v439_v0 }
  0x2f   :  { %307 = vmatpush3.msra.mxu0 %v57_v15  ;;  %342 = vmatpush3.msra.mxu1 %v151_v26 }
  0x30   :  { %308 = vmatprep.subr.mxu0 %v439_v0  ;;  %343 = vmatprep.subr.mxu1 %v439_v0 }
  0x31   :  { %309 = vmatpush3.msra.mxu0 %v56_v17  ;;  %344 = vmatpush3.msra.mxu1 %v150_v27 }
  0x32   :  { %310 = vmatprep.subr.mxu0 %v439_v0  ;;  %345 = vmatprep.subr.mxu1 %v439_v0 }
  0x33   :  { %311 = vmatpush3.msra.mxu0 %v55_v18  ;;  %346 = vmatpush3.msra.mxu1 %v149_v28 }
  0x34   :  { %312 = vmatprep.subr.mxu0 %v439_v0  ;;  %347 = vmatprep.subr.mxu1 %v439_v0 }
  0x35   :  { %313 = vmatpush3.msra.mxu0 %v54_v19  ;;  %348 = vmatpush3.msra.mxu1 %v148_v29 }
  0x36   :  { %314 = vmatprep.subr.mxu0 %v439_v0  ;;  %349 = vmatprep.subr.mxu1 %v439_v0 }
  0x37   :  { %315 = vmatpush3.msra.mxu0 %v53_v20  ;;  %350 = vmatpush3.msra.mxu1 %v147_v30 }
  0x38   :  { %316 = vmatprep.subr.mxu0 %v439_v0  ;;  %351 = vmatprep.subr.mxu1 %v439_v0 }
  0x39   :  { %317 = vmatpush3.msra.mxu0 %v52_v21  ;;  %352 = vmatpush3.msra.mxu1 %v146_v31 }
  0x3a   :  { %318 = vmatprep.subr.mxu0 %v439_v0  ;;  %353 = vmatprep.subr.mxu1 %v439_v0 }
  0x3b   :  { %319 = vmatpush3.msra.mxu0 %v51_v22  ;;  %354 = vmatpush3.msra.mxu1 %v145_v32 }
  0x3c   :  { %320 = vmatprep.subr.mxu0 %v439_v0  ;;  %355 = vmatprep.subr.mxu1 %v439_v0 }
  0x3d   :  { %321 = vmatpush3.msra.mxu0 %v50_v23  ;;  %356 = vmatpush3.msra.mxu1 %v144_v33 }
  0x3e   :  { %323 = vmatmul.mubr.f32.vlgmr.msra.gmra.mxu0 %v49_v24 }
  0xfe   :  { %v139_v35 = vpop.f32.mrf.mxu0 }
  0xff   :  { %v140_v36 = vadd.f32 %v254_v34, %v139_v35 }
 0x100   :  { %v324_v37 = vpop.f32.mrf.mxu0 }
 0x101   :  { %367 = vtanh.f32 %v140_v36 }
 0x10e   :  { %v368_v38 = vpop.eup %367 }
 0x10f   :  { %358 = vmatmul.mubr.f32.vlgmr.msra.gmra.mxu1 %v368_v38 }
 0x1cf   :  { %v233_v40 = vpop.f32.mrf.mxu1 }
 0x1d0   :  { %v234_v41 = vadd.f32 %v255_v39, %v233_v40 }
 0x1d1   :  { %v359_v42 = vpop.f32.mrf.mxu1 }
 0x1d2   :  { %237 = vst [vmem:[#allocation7] sm:$0xff] %v234_v41 }
 0x1d3   :  { %420 = shalt.err (!%p417_p0)
}
 0x1d4   :  { %247 = dma.vmem_to_hbm [thread:$0]  %s245_s9, 128, %s529_s5, [#allocation4]  }
 0x1d5   :  { %433 = dma.done.wait [#allocation4], 128  }
 0x1d6   :  { %434 = vsyncadd [#allocation4], 4294967168 }
 0x1d7   :  { %251 = vsyncpa [#allocation3], 1 }
 0x1d8   :  { %252 = vsyncpa [#allocation6], 1 }
 0x1d9   :  { %253 = vsyncpa [#allocation4], 1 }

</bundles_post_ra>
